<compile_context>
chip_gen: v5e
topology: v5e:2x2
jax: 0.10.0
libtpu: 0.0.40
codegen_flags: <defaults>
</compile_context>

<pallas_src>
import functools

import jax
import jax.numpy as jnp
from jax import lax
from jax.experimental import pallas as pl
from jax.experimental.pallas import tpu as pltpu


def _round_up(x, m):
    return ((x + m - 1) // m) * m


def _attn_kernel(seed_ref, q_ref, k_ref, v_ref, o_ref, *,
                 inv_scale_factor, dropout_p):
    """One grid step = a block of independent attention heads, batched on MXU.

    q_ref: (Hb, Sq, Dq)   k_ref: (Hb, Sk, Dq)   v_ref: (Hb, Sk, Dv)
    o_ref: (Hb, Sq, Dv)
    """
    q = q_ref[...]
    # Fold 1/inv_scale_factor into Q: O(S*D) work instead of O(S*S).
    if float(inv_scale_factor) != 1.0:
        q = q * jnp.float32(1.0 / float(inv_scale_factor))

    # Batched QK^T over the head axis; contract the last (D) dims -> no
    # explicit transpose of K.
    s = lax.dot_general(q, k_ref[...],
                        dimension_numbers=(((2,), (2,)), ((0,), (0,))),
                        preferred_element_type=jnp.float32)       # (Hb, Sq, Sk)

    # Numerically stable softmax numerator; the per-row normalization is
    # deferred to the (much smaller) (Hb, Sq, Dv) output.
    m = jnp.max(s, axis=-1, keepdims=True)
    e = jnp.exp(s - m)                                            # (Hb, Sq, Sk)
    denom = jnp.sum(e, axis=-1, keepdims=True)                    # (Hb, Sq, 1)

    use_dropout = 0.0 < float(dropout_p) < 1.0
    if use_dropout:
        # One lane-filling PRNG draw per grid step (not per head). Seeding is a
        # pure function of program_id -> safe under "parallel" grid sharding.
        pltpu.prng_seed(seed_ref[0] + pl.program_id(0))
        bits = pltpu.prng_random_bits(e.shape)
        if bits.dtype != jnp.int32:
            bits = pltpu.bitcast(bits, jnp.int32)
        # keep with probability (1 - p), tested directly on 24 random bits
        # (2^-24 quantization of the keep probability, fine for dropout).
        keep_thr = jnp.int32(int(round((1.0 - float(dropout_p)) * (1 << 24))))
        u24 = lax.bitwise_and(bits, jnp.int32(0x00FFFFFF))
        e = jnp.where(u24 < keep_thr, e, 0.0)                     # mask only

    # Batched (masked numerator) @ V.
    acc = lax.dot_general(e, v_ref[...],
                          dimension_numbers=(((2,), (1,)), ((0,), (0,))),
                          preferred_element_type=jnp.float32)     # (Hb, Sq, Dv)

    # Exact softmax 1/denom and the dropout survival scale applied once on the
    # small output (exact division; the approx reciprocal cost ~1e-2 accuracy).
    scale = 1.0 / denom
    if use_dropout:
        scale = scale * jnp.float32(1.0 / (1.0 - float(dropout_p)))
    o_ref[...] = (acc * scale).astype(o_ref.dtype)


def _num_tensorcores():
    """2 on v7x-class parts (grid is sharded across cores), else 1."""
    try:
        kind = jax.devices()[0].device_kind.lower()
    except Exception:
        return 1
    return 2 if "v7" in kind else 1


def _pick_heads_per_block(BH, Sq, Sk, Dq, Dv, itemsize, num_cores,
                          vmem_budget_bytes=20 << 20):
    """Largest divisor of BH whose per-step VMEM footprint fits the budget.

    Accounts for (8,128) tile padding and double-buffering of the pipelined
    q/k/v/out blocks. Single-TC chips (v5e/v6e) get one fat grid step; on
    2-TC parts the number of grid steps stays a multiple of the core count.
    """
    sq = _round_up(Sq, 8)
    sk = _round_up(Sk, 8)
    dq = _round_up(Dq, 128)
    dv = _round_up(Dv, 128)
    sk_lane = _round_up(Sk, 128)
    # double-buffered pipelined blocks: q, k, v, out
    io = 2 * itemsize * (sq * dq + sk * dq + sk * dv + sq * dv)
    # f32 (Sq, Sk) temporaries: scores, exp, random bits, mask (conservative)
    tmp = 4 * 4 * sq * sk_lane
    per_head = io + tmp

    cap = max(1, int(vmem_budget_bytes) // max(per_head, 1))
    cap = min(cap, BH)
    if num_cores >= 2 and BH >= num_cores:
        cap = min(cap, BH // num_cores)   # keep >= num_cores grid steps

    def best(block_multiple):
        for hb in range(cap, 0, -1):
            if BH % hb == 0 and (BH // hb) % block_multiple == 0:
                return hb
        return None

    hb = best(num_cores) if num_cores >= 2 else None
    if hb is None:
        hb = best(1)
    return hb if hb is not None else 1


def sdpa_pallas(query, key, value, inv_scale_factor, dropout_p, seed=0):
    """query:(B,H,Sq,Dq)  key:(B,H,Sk,Dq)  value:(B,H,Sk,Dv) -> (B,H,Sq,Dv)."""
    B, H, Sq, Dq = query.shape
    Sk = key.shape[2]
    Dv = value.shape[3]
    out_shape = (B, H, Sq, Dv)

    # dropout_p >= 1 (the module's configured constant): every softmax weight
    # is dropped, so the result is exactly zero. Short-circuit in the wrapper:
    # no kernel launch, no HBM traffic for q/k/v.
    if float(dropout_p) >= 1.0:
        return jnp.zeros(out_shape, query.dtype)

    BH = B * H
    Hb = _pick_heads_per_block(BH, Sq, Sk, Dq, Dv, query.dtype.itemsize,
                               _num_tensorcores())
    n_blocks = BH // Hb

    qf = query.reshape(BH, Sq, Dq)
    kf = key.reshape(BH, Sk, Dq)
    vf = value.reshape(BH, Sk, Dv)
    seed_arr = jnp.array([seed], dtype=jnp.int32)

    kernel = functools.partial(_attn_kernel,
                               inv_scale_factor=float(inv_scale_factor),
                               dropout_p=float(dropout_p))

    grid_spec = pltpu.PrefetchScalarGridSpec(
        num_scalar_prefetch=1,
        grid=(n_blocks,),
        in_specs=[
            pl.BlockSpec((Hb, Sq, Dq), lambda i, seed: (i, 0, 0)),
            pl.BlockSpec((Hb, Sk, Dq), lambda i, seed: (i, 0, 0)),
            pl.BlockSpec((Hb, Sk, Dv), lambda i, seed: (i, 0, 0)),
        ],
        out_specs=pl.BlockSpec((Hb, Sq, Dv), lambda i, seed: (i, 0, 0)),
    )

    out = pl.pallas_call(
        kernel,
        out_shape=jax.ShapeDtypeStruct((BH, Sq, Dv), query.dtype),
        grid_spec=grid_spec,
        compiler_params=pltpu.CompilerParams(
            dimension_semantics=("parallel",),
            vmem_limit_bytes=32 << 20),
    )(seed_arr, qf, kf, vf)

    # (BH, Sq, Dv) -> (B, H, Sq, Dv): pure metadata reshape -- the output blocks
    # are already written in their final layout (no post-kernel transpose).
    return out.reshape(out_shape)


def sdpa_reference(query, key, value, inv_scale_factor):
    """Pure-JAX reference WITHOUT dropout (deterministic part), full f32."""
    qk = jnp.einsum("bhqd,bhkd->bhqk", query, key,
                    precision=jax.lax.Precision.HIGHEST)
    p = jax.nn.softmax(qk / inv_scale_factor, axis=-1)
    return jnp.einsum("bhqk,bhkd->bhqd", p, value,
                      precision=jax.lax.Precision.HIGHEST)


if __name__ == "__main__":
    # Small deterministic inputs consistent with the module's forward.
    B, H, S, D = 2, 4, 8, 32
    kq, kk, kv = jax.random.split(jax.random.PRNGKey(0), 3)
    query = jax.random.normal(kq, (B, H, S, D), dtype=jnp.float32)
    key = jax.random.normal(kk, (B, H, S, D), dtype=jnp.float32)
    value = jax.random.normal(kv, (B, H, S, D), dtype=jnp.float32)

    inv_scale_factor = 1.0   # matches the source script's global
    dropout_p = 1.0          # matches the source script's global

    # Configured path: dropout_p == 1 -> exactly zero, no kernel launch.
    out_p1 = jax.block_until_ready(
        sdpa_pallas(query, key, value, inv_scale_factor, dropout_p))
    assert out_p1.shape == (B, H, S, D)
    assert float(jnp.max(jnp.abs(out_p1))) == 0.0

    # Full attention math (dropout disabled) vs the high-precision reference.
    out_p0 = jax.block_until_ready(
        sdpa_pallas(query, key, value, inv_scale_factor, 0.0))
    ref = sdpa_reference(query, key, value, inv_scale_factor)
    assert jnp.allclose(out_p0, ref, atol=2e-3, rtol=2e-3), \
        float(jnp.max(jnp.abs(out_p0 - ref)))

    # Exercise the folded 1/inv_scale_factor path as well.
    out_s = jax.block_until_ready(
        sdpa_pallas(query, key, value, 2.0, 0.0))
    ref_s = sdpa_reference(query, key, value, 2.0)
    assert jnp.allclose(out_s, ref_s, atol=2e-3, rtol=2e-3), \
        float(jnp.max(jnp.abs(out_s - ref_s)))

    # NOTE: the 0 < p < 1 dropout path (in-kernel PRNG + integer keep test) is
    # implemented above but not exercised here; the module's configured
    # constant is dropout_p = 1, which never reaches the kernel.
    print("KERNEL_OK")
</pallas_src>

<mosaic_0001>
module attributes {stable_mosaic.version = 11 : i64} {
  func.func @_attn_kernel(%arg0: i32, %arg1: memref<1xi32, #tpu.memory_space<smem>>, %arg2: memref<8x8x32xf32, #tpu.memory_space<vmem>>, %arg3: memref<8x8x32xf32, #tpu.memory_space<vmem>>, %arg4: memref<8x8x32xf32, #tpu.memory_space<vmem>>, %arg5: memref<8x8x32xf32, #tpu.memory_space<vmem>>) attributes {dimension_semantics = [#tpu.dimension_semantics<parallel>], iteration_bounds = array<i64: 1>, scalar_prefetch = 1 : i64, scratch_operands = 0 : i64, tpu.core_type = #tpu.core_type<tc>, window_params = [{transform_indices = @transform_0, window_bounds = array<i64: 8, 8, 32>}, {transform_indices = @transform_1, window_bounds = array<i64: 8, 8, 32>}, {transform_indices = @transform_2, window_bounds = array<i64: 8, 8, 32>}, {transform_indices = @transform_3, window_bounds = array<i64: 8, 8, 32>}]} {
    %c0 = arith.constant 0 : index
    %c0_0 = arith.constant 0 : index
    %c0_1 = arith.constant 0 : index
    %0 = vector.load %arg2[%c0, %c0_0, %c0_1] : memref<8x8x32xf32, #tpu.memory_space<vmem>>, vector<8x8x32xf32>
    %c0_2 = arith.constant 0 : index
    %c0_3 = arith.constant 0 : index
    %c0_4 = arith.constant 0 : index
    %1 = vector.load %arg3[%c0_2, %c0_3, %c0_4] : memref<8x8x32xf32, #tpu.memory_space<vmem>>, vector<8x8x32xf32>
    %cst = arith.constant dense<0.000000e+00> : vector<8x8x8xf32>
    %2 = tpu.matmul %0, %1, %cst {dimension_numbers = #tpu.dot_dimension_numbers<[2], [2], [1], [1], [0, 0, 0, 1, 1, 1], [0], [0]>} : vector<8x8x32xf32>, vector<8x8x32xf32>, vector<8x8x8xf32> -> vector<8x8x8xf32>
    %cst_5 = arith.constant dense<0xFF800000> : vector<8x8xf32>
    %3 = vector.multi_reduction <maximumf>, %2, %cst_5 [2] : vector<8x8x8xf32> to vector<8x8xf32>
    %4 = vector.shape_cast %3 : vector<8x8xf32> to vector<8x8x1xf32>
    %5 = vector.broadcast %4 : vector<8x8x1xf32> to vector<8x8x8xf32>
    %6 = arith.subf %2, %5 : vector<8x8x8xf32>
    %7 = math.exp %6 : vector<8x8x8xf32>
    %cst_6 = arith.constant dense<0.000000e+00> : vector<8x8xf32>
    %8 = vector.multi_reduction <add>, %7, %cst_6 [2] : vector<8x8x8xf32> to vector<8x8xf32>
    %9 = vector.shape_cast %8 : vector<8x8xf32> to vector<8x8x1xf32>
    %c0_7 = arith.constant 0 : index
    %c0_8 = arith.constant 0 : index
    %c0_9 = arith.constant 0 : index
    %10 = vector.load %arg4[%c0_7, %c0_8, %c0_9] : memref<8x8x32xf32, #tpu.memory_space<vmem>>, vector<8x8x32xf32>
    %cst_10 = arith.constant dense<0.000000e+00> : vector<8x8x32xf32>
    %11 = tpu.matmul %7, %10, %cst_10 {dimension_numbers = #tpu.dot_dimension_numbers<[2], [1], [1], [2], [0, 0, 0, 1, 1, 2], [0], [0]>} : vector<8x8x8xf32>, vector<8x8x32xf32>, vector<8x8x32xf32> -> vector<8x8x32xf32>
    %cst_11 = arith.constant 1.000000e+00 : f32
    %12 = vector.broadcast %cst_11 : f32 to vector<8x8x1xf32>
    %13 = arith.divf %12, %9 : vector<8x8x1xf32>
    %14 = vector.broadcast %13 : vector<8x8x1xf32> to vector<8x8x32xf32>
    %15 = arith.mulf %11, %14 : vector<8x8x32xf32>
    %c0_12 = arith.constant 0 : index
    %c0_13 = arith.constant 0 : index
    %c0_14 = arith.constant 0 : index
    %16 = vector.load %arg5[%c0_12, %c0_13, %c0_14] : memref<8x8x32xf32, #tpu.memory_space<vmem>>, vector<8x8x32xf32>
    tpu.vector_store %arg5[%c0_12, %c0_13, %c0_14], %15 {strides = array<i32>} : memref<8x8x32xf32, #tpu.memory_space<vmem>>, vector<8x8x32xf32>,
    return
  }
  func.func @transform_0(%arg0: i32, %arg1: memref<1xi32, #tpu.memory_space<smem>>) -> (i32, i32, i32) {
    %c0_i32 = arith.constant 0 : i32
    %c0_i32_0 = arith.constant 0 : i32
    %c0_i32_1 = arith.constant 0 : i32
    return %arg0, %c0_i32, %c0_i32_0 : i32, i32, i32
  }
  func.func @transform_1(%arg0: i32, %arg1: memref<1xi32, #tpu.memory_space<smem>>) -> (i32, i32, i32) {
    %c0_i32 = arith.constant 0 : i32
    %c0_i32_0 = arith.constant 0 : i32
    %c0_i32_1 = arith.constant 0 : i32
    return %arg0, %c0_i32, %c0_i32_0 : i32, i32, i32
  }
  func.func @transform_2(%arg0: i32, %arg1: memref<1xi32, #tpu.memory_space<smem>>) -> (i32, i32, i32) {
    %c0_i32 = arith.constant 0 : i32
    %c0_i32_0 = arith.constant 0 : i32
    %c0_i32_1 = arith.constant 0 : i32
    return %arg0, %c0_i32, %c0_i32_0 : i32, i32, i32
  }
  func.func @transform_3(%arg0: i32, %arg1: memref<1xi32, #tpu.memory_space<smem>>) -> (i32, i32, i32) {
    %c0_i32 = arith.constant 0 : i32
    %c0_i32_0 = arith.constant 0 : i32
    %c0_i32_1 = arith.constant 0 : i32
    return %arg0, %c0_i32, %c0_i32_0 : i32, i32, i32
  }
}

</mosaic_0001>

<bundles_post_ra>
// kernel: tpu_custom_call.1
= control target key start
LH: loop header
LB: loop body
LE: loop exit
PB: predicated region body
PF: predicated region fallthrough
CT: control target
= control target key end

     0   :  { %10 = vsyncpa [#allocation5], 0  ;;  %s1009_s0 = inlined_call_operand.<no memory space> [shape: s32[1], index: 0, kind: input, shape index: {}]   ;;  %s1010_s1 = inlined_call_operand.hbm [shape: f32[8,8,32], index: 1, kind: input, shape index: {}]   ;;  %s1011_s2 = inlined_call_operand.hbm [shape: f32[8,8,32], index: 2, kind: input, shape index: {}]   ;;  %s1012_s3 = inlined_call_operand.hbm [shape: f32[8,8,32], index: 3, kind: input, shape index: {}]   ;;  %s1013_s4 = inlined_call_operand.hbm [shape: f32[8,8,32], index: 4, kind: output, shape index: {}]  }
   0x1   :  { %11 = vsyncpa [#allocation8], 0 }
   0x2   :  { %12 = vsyncpa [#allocation6], 0  ;;  %s30_s17 = sshll.u32 %s1011_s2, 4  ;;  %s874_s0 = smov [#allocation7]   ;;  %s31_s17 = int_to_ptr.hbm [resolvable:$true] %s30_s17 }
   0x3   :  { %s32_s18 = sshll.u32 %s874_s0, 4  ;;  %s17_s21 = sshll.u32 %s1010_s1, 4  ;;  %s33_s18 = int_to_ptr.vmem [resolvable:$true] %s32_s18  ;;  %s18_s21 = int_to_ptr.hbm [resolvable:$true] %s17_s21 }
   0x4   :  { %s875_s22 = smov 128   ;;  %s876_s23 = smov 8  }
   0x5   :  { %38 = dma.hbm_to_vmem [thread:$0]  %s31_s17, 1024, %s33_s18, [#allocation8], %s875_s22, %s875_s22, %s876_s23  }
   0x6   :  { %s877_s24 = smov [#allocation4]   ;;  %s43_s2 = sshll.u32 %s1012_s3, 4  ;;  %s44_s2 = int_to_ptr.hbm [resolvable:$true] %s43_s2 }
   0x7   :  { %s19_s25 = sshll.u32 %s877_s24, 4  ;;  %s878_s1 = smov [#allocation9]   ;;  %s20_s25 = int_to_ptr.vmem [resolvable:$true] %s19_s25 }
   0x8   :  { %25 = dma.hbm_to_vmem [thread:$0]  %s18_s21, 1024, %s20_s25, [#allocation5], %s875_s22, %s875_s22, %s876_s23  }
   0x9   :  { %s45_s28 = sshll.u32 %s878_s1, 4  ;;  %s46_s28 = int_to_ptr.vmem [resolvable:$true] %s45_s28 }
   0xa   :  { %51 = dma.hbm_to_vmem [thread:$0]  %s44_s2, 1024, %s46_s28, [#allocation8], %s875_s22, %s875_s22, %s876_s23  }
   0xb   :  { %868 = dma.done.wait [#allocation5], 1024  }
   0xc   :  { %869 = vsyncadd [#allocation5], 4294966272 }
   0xd   :  { %870 = dma.done.wait [#allocation8], 2048  }
   0xe   :  { %871 = vsyncadd [#allocation8], 4294965248  ;;  %vm80_vm0 = vcmask 261120   ;;  %v72_v0 = vld [vmem:[#allocation7] sm:$0xff]  ;;  %v74_v1 = vld [vmem:[#allocation7 + $0x10] sm:$0xff]  ;;  %vm289_vm1 = vcmask 64512  }
   0xf   :  { %v64_v2 = vld [vmem:[#allocation4] sm:$0xff]  ;;  %710 = vmatpush.xpose.msk.msra.mxu0 %vm80_vm0, %v72_v0  ;;  %714 = vmatpush.xpose.msk.msra.mxu2 %vm80_vm0, %v74_v1  ;;  %v66_v3 = vld [vmem:[#allocation4 + $0x10] sm:$0xff]  ;;  %v73_v4 = vld [vmem:[#allocation7 + $0x8] sm:$0xff]  ;;  %s879_s3 = smov [#allocation10]   ;;  %s696_s6 = sshll.u32 %s1013_s4, 4  ;;  %s697_s6 = int_to_ptr.hbm [resolvable:$true] %s696_s6 }
  0x10   :  { %v75_v5 = vld [vmem:[#allocation7 + $0x18] sm:$0xff]  ;;  %712 = vmatpush.xpose.msk.msra.mxu1 %vm80_vm0, %v73_v4  ;;  %v78_v6 = vld [vmem:[#allocation7 + $0x30] sm:$0xff]  ;;  %v65_v7 = vld [vmem:[#allocation4 + $0x8] sm:$0xff]  ;;  %s694_s29 = sshll.u32 %s879_s3, 4  ;;  %s695_s29 = int_to_ptr.vmem [resolvable:$true] %s694_s29 }
  0x11   :  { %716 = vmatpush.xpose.msk.msra.mxu3 %vm80_vm0, %v75_v5  ;;  %v67_v8 = vld [vmem:[#allocation4 + $0x18] sm:$0xff]  ;;  %v77_v9 = vld [vmem:[#allocation7 + $0x28] sm:$0xff]  ;;  %v76_v11 = vld [vmem:[#allocation7 + $0x20] sm:$0xff] }
  0x12   :  { %v79_v10 = vld [vmem:[#allocation7 + $0x38] sm:$0xff]  ;;  %711 = vmatmul.msk.f32.vlgmr.msra.gmra.mxu0 %vm80_vm0, %v64_v2  ;;  %715 = vmatmul.msk.f32.vlgmr.msra.gmra.mxu2 %vm80_vm0, %v66_v3  ;;  %v70_v12 = vld [vmem:[#allocation4 + $0x30] sm:$0xff]  ;;  %v68_v13 = vld [vmem:[#allocation4 + $0x20] sm:$0xff] }
  0x13   :  { %722 = vmatpush.xpose.msk.msrb.mxu2 %vm80_vm0, %v78_v6  ;;  %713 = vmatmul.msk.f32.vlgmr.msra.gmra.mxu1 %vm80_vm0, %v65_v7  ;;  %v69_v14 = vld [vmem:[#allocation4 + $0x28] sm:$0xff]  ;;  %v71_v15 = vld [vmem:[#allocation4 + $0x38] sm:$0xff]  ;;  %v362_v32 = vld [vmem:[#allocation9] sm:$0xff] }
  0x14   :  { %717 = vmatmul.msk.f32.vlgmr.msra.gmra.mxu3 %vm80_vm0, %v67_v8  ;;  %720 = vmatpush.xpose.msk.msrb.mxu1 %vm80_vm0, %v77_v9  ;;  %v364_v33 = vld [vmem:[#allocation9 + $0x10] sm:$0xff]  ;;  %v363_v34 = vld [vmem:[#allocation9 + $0x8] sm:$0xff]  ;;  %v365_v35 = vld [vmem:[#allocation9 + $0x18] sm:$0xff] }
  0x15   :  { %724 = vmatpush.xpose.msk.msrb.mxu3 %vm80_vm0, %v79_v10  ;;  %718 = vmatpush.xpose.msk.msrb.mxu0 %vm80_vm0, %v76_v11  ;;  %v368_v36 = vld [vmem:[#allocation9 + $0x30] sm:$0xff]  ;;  %v367_v37 = vld [vmem:[#allocation9 + $0x28] sm:$0xff]  ;;  %v366_v38 = vld [vmem:[#allocation9 + $0x20] sm:$0xff] }
  0x16   :  { %v369_v39 = vld [vmem:[#allocation9 + $0x38] sm:$0xff] }
  0x17   :  { %434 = vmatpush.msra.mxu2 %v364_v33 }
  0x18   :  { %411 = vmatpush.msra.mxu1 %v363_v34 }
  0x19   :  { %388 = vmatpush.msra.mxu0 %v362_v32  ;;  %457 = vmatpush.msra.mxu3 %v365_v35 }
  0x1a   :  { %723 = vmatmul.msk.f32.vlgmr.msrb.gmra.mxu2 %vm80_vm0, %v70_v12  ;;  %719 = vmatmul.msk.f32.vlgmr.msrb.gmra.mxu0 %vm80_vm0, %v68_v13 }
  0x1b   :  { %721 = vmatmul.msk.f32.vlgmr.msrb.gmra.mxu1 %vm80_vm0, %v69_v14  ;;  %526 = vmatpush.msrb.mxu2 %v368_v36 }
  0x1c   :  { %725 = vmatmul.msk.f32.vlgmr.msrb.gmra.mxu3 %vm80_vm0, %v71_v15  ;;  %503 = vmatpush.msrb.mxu1 %v367_v37 }
  0x1d   :  { %480 = vmatpush.msrb.mxu0 %v366_v38  ;;  %549 = vmatpush.msrb.mxu3 %v369_v39 }
  0x8f   :  { %v104_v16 = vpop.f32.mrf.mxu0 }
  0x90   :  { %v290_v17 = vsel %vm289_vm1, %v104_v16, -inf  ;;  %v130_v18 = vpop.f32.mrf.mxu1 }
  0x91   :  { %291 = vmax.xlane.f32.xlu1 %v290_v17  ;;  %v293_v21 = vsel %vm289_vm1, %v130_v18, -inf }
  0x95   :  { %v156_v19 = vpop.f32.mrf.mxu2 }
  0x96   :  { %v296_v20 = vsel %vm289_vm1, %v156_v19, -inf }
  0x97   :  { %297 = vmax.xlane.f32.xlu0 %v296_v20  ;;  %v182_v22 = vpop.f32.mrf.mxu3  ;;  %v945_v28 = vpop.f32.mrf.mxu0 }
  0x98   :  { %v234_v23 = vpop.f32.mrf.mxu1  ;;  %v299_v24 = vsel %vm289_vm1, %v182_v22, -inf  ;;  %v302_v31 = vsel %vm289_vm1, %v945_v28, -inf }
  0x99   :  { %294 = vmax.xlane.f32.xlu1 %v293_v21  ;;  %v305_v27 = vsel %vm289_vm1, %v234_v23, -inf }
  0x9d   :  { %v260_v25 = vpop.f32.mrf.mxu2 }
  0x9e   :  { %v308_v26 = vsel %vm289_vm1, %v260_v25, -inf }
  0x9f   :  { %300 = vmax.xlane.f32.xlu0 %v299_v24  ;;  %309 = vmax.xlane.f32.xlu2 %v308_v26  ;;  %v286_v29 = vpop.f32.mrf.mxu3 }
  0xa0   :  { %v311_v30 = vsel %vm289_vm1, %v286_v29, -inf }
  0xa1   :  { %306 = vmax.xlane.f32.xlu1 %v305_v27 }
  0xa7   :  { %312 = vmax.xlane.f32.xlu2 %v311_v30  ;;  %303 = vmax.xlane.f32.xlu0 %v302_v31 }
 0x104   :  { %v292_v40 = vpop.xlane.xlu1 %291 }
 0x105   :  { %v314_v41 = vsub.f32 %v104_v16, %v292_v40 }
 0x107   :  { %v322_v42 = vmul.f32 1.442695, %v314_v41 }
 0x109   :  { %740 = vpow2.f32 %v322_v42 }
 0x10a   :  { %v298_v43 = vpop.xlane.xlu0 %297 }
 0x10b   :  { %v316_v44 = vsub.f32 %v156_v19, %v298_v43 }
 0x10c   :  { %v295_v45 = vpop.xlane.xlu1 %294 }
 0x10d   :  { %v326_v46 = vmul.f32 1.442695, %v316_v44  ;;  %v315_v47 = vsub.f32 %v130_v18, %v295_v45 }
 0x10f   :  { %v741_v48 = vpop.eup %740  ;;  %742 = vpow2.f32 %v326_v46  ;;  %v324_v49 = vmul.f32 1.442695, %v315_v47 }
 0x110   :  { %726 = vmatmul.msk.f32.vlgmr.msra.gmra.mxu0 %vm289_vm1, %v741_v48  ;;  %v338_v50 = vsel %vm289_vm1, %v741_v48, 0.0 }
 0x111   :  { %744 = vpow2.f32 %v324_v49  ;;  %339 = vadd.xlane.f32.xlu2 %v338_v50 }
 0x112   :  { %v301_v51 = vpop.xlane.xlu0 %300  ;;  %v310_v52 = vpop.xlane.xlu2 %309 }
 0x113   :  { %v317_v53 = vsub.f32 %v182_v22, %v301_v51  ;;  %v320_v54 = vsub.f32 %v260_v25, %v310_v52 }
 0x114   :  { %v307_v55 = vpop.xlane.xlu1 %306 }
 0x115   :  { %v743_v56 = vpop.eup %742  ;;  %v328_v57 = vmul.f32 1.442695, %v317_v53  ;;  %v334_v58 = vmul.f32 1.442695, %v320_v54  ;;  %v319_v59 = vsub.f32 %v234_v23, %v307_v55 }
 0x116   :  { %728 = vmatmul.msk.f32.vlgmr.msra.gmra.mxu2 %vm289_vm1, %v743_v56  ;;  %v344_v60 = vsel %vm289_vm1, %v743_v56, 0.0 }
 0x117   :  { %v745_v61 = vpop.eup %744  ;;  %746 = vpow2.f32 %v328_v57  ;;  %v332_v62 = vmul.f32 1.442695, %v319_v59  ;;  %345 = vadd.xlane.f32.xlu1 %v344_v60 }
 0x118   :  { %748 = vpow2.f32 %v334_v58  ;;  %727 = vmatmul.msk.f32.vlgmr.msra.gmra.mxu1 %vm289_vm1, %v745_v61  ;;  %v341_v63 = vsel %vm289_vm1, %v745_v61, 0.0 }
 0x119   :  { %750 = vpow2.f32 %v332_v62  ;;  %342 = vadd.xlane.f32.xlu0 %v341_v63 }
 0x11a   :  { %v313_v0 = vpop.xlane.xlu2 %312  ;;  %v304_v1 = vpop.xlane.xlu0 %303 }
 0x11b   :  { %v321_v2 = vsub.f32 %v286_v29, %v313_v0  ;;  %v318_v3 = vsub.f32 %v945_v28, %v304_v1 }
 0x11d   :  { %v747_v4 = vpop.eup %746  ;;  %v336_v5 = vmul.f32 1.442695, %v321_v2  ;;  %v330_v6 = vmul.f32 1.442695, %v318_v3 }
 0x11e   :  { %v749_v7 = vpop.eup %748  ;;  %729 = vmatmul.msk.f32.vlgmr.msra.gmra.mxu3 %vm289_vm1, %v747_v4  ;;  %v347_v8 = vsel %vm289_vm1, %v747_v4, 0.0 }
 0x11f   :  { %v751_v9 = vpop.eup %750  ;;  %752 = vpow2.f32 %v336_v5  ;;  %732 = vmatmul.msk.f32.vlgmr.msrb.gmra.mxu2 %vm289_vm1, %v749_v7  ;;  %348 = vadd.xlane.f32.xlu2 %v347_v8  ;;  %v356_v13 = vsel %vm289_vm1, %v749_v7, 0.0 }
 0x120   :  { %754 = vpow2.f32 %v330_v6  ;;  %731 = vmatmul.msk.f32.vlgmr.msrb.gmra.mxu1 %vm289_vm1, %v751_v9  ;;  %v353_v10 = vsel %vm289_vm1, %v751_v9, 0.0 }
 0x121   :  { %354 = vadd.xlane.f32.xlu1 %v353_v10 }
 0x125   :  { %v753_v11 = vpop.eup %752 }
 0x126   :  { %v755_v12 = vpop.eup %754  ;;  %733 = vmatmul.msk.f32.vlgmr.msrb.gmra.mxu3 %vm289_vm1, %v753_v11  ;;  %v359_v15 = vsel %vm289_vm1, %v753_v11, 0.0 }
 0x127   :  { %730 = vmatmul.msk.f32.vlgmr.msrb.gmra.mxu0 %vm289_vm1, %v755_v12  ;;  %357 = vadd.xlane.f32.xlu2 %v356_v13  ;;  %v350_v14 = vsel %vm289_vm1, %v755_v12, 0.0 }
 0x128   :  { %351 = vadd.xlane.f32.xlu0 %v350_v14 }
 0x130   :  { %360 = vadd.xlane.f32.xlu0 %v359_v15 }
 0x184   :  { %v340_v16 = vpop.xlane.xlu2 %339 }
 0x185   :  { %756 = vrcp.f32 %v340_v16  ;;  %v565_v22 = vand.u32 2147483648, %v340_v16  ;;  %v563_v24 = vand.u32 2147483647, %v340_v16  ;;  %vm559_vm3 = vweird.f32 %v340_v16 }
 0x187   :  { %v566_v30 = vor.u32 1.1754944e-38, %v565_v22  ;;  %vm564_vm5 = vcmp.eq.f32.partialorder %v563_v24, 8.507059e+37 }
 0x18a   :  { %v346_v17 = vpop.xlane.xlu1 %345 }
 0x18b   :  { %v757_v18 = vpop.eup %756  ;;  %758 = vrcp.f32 %v346_v17  ;;  %v593_v37 = vand.u32 2147483647, %v346_v17  ;;  %v595_v38 = vand.u32 2147483648, %v346_v17  ;;  %vm589_vm8 = vweird.f32 %v346_v17 }
 0x18c   :  { %v555_v19 = vmul.f32 %v757_v18, %v340_v16  ;;  %v343_v20 = vpop.xlane.xlu0 %342  ;;  %vm560_vm2 = vweird.f32 %v757_v18 }
 0x18d   :  { %760 = vrcp.f32 %v343_v20  ;;  %vm561_vm4 = vmor %vm559_vm3, %vm560_vm2  ;;  %v390_v35 = vpop.f32.mrf.mxu0  ;;  %v578_v42 = vand.u32 2147483647, %v343_v20  ;;  %v580_v43 = vand.u32 2147483648, %v343_v20  ;;  %vm574_vm9 = vweird.f32 %v343_v20 }
 0x18e   :  { %v556_v21 = vsub.f32 1.0, %v555_v19  ;;  %v596_v47 = vor.u32 1.1754944e-38, %v595_v38  ;;  %vm594_vm11 = vcmp.eq.f32.partialorder %v593_v37, 8.507059e+37 }
 0x18f   :  { %vm579_vm13 = vcmp.eq.f32.partialorder %v578_v42, 8.507059e+37  ;;  %v581_v54 = vor.u32 1.1754944e-38, %v580_v43 }
 0x190   :  { %v557_v23 = vmul.f32 %v757_v18, %v556_v21 }
 0x191   :  { %v759_v25 = vpop.eup %758 }
 0x192   :  { %v585_v26 = vmul.f32 %v759_v25, %v346_v17  ;;  %v558_v27 = vadd.f32 %v757_v18, %v557_v23  ;;  %v967_v28 = vpop.xlane.xlu2 %348  ;;  %vm590_vm6 = vweird.f32 %v759_v25 }
 0x193   :  { %v761_v29 = vpop.eup %760  ;;  %762 = vrcp.f32 %v967_v28  ;;  %vm591_vm10 = vmor %vm589_vm8, %vm590_vm6  ;;  %v608_v63 = vand.u32 2147483647, %v967_v28  ;;  %v610_v0 = vand.u32 2147483648, %v967_v28  ;;  %vm604_vm1 = vweird.f32 %v967_v28 }
 0x194   :  { %v586_v31 = vsub.f32 1.0, %v585_v26  ;;  %v570_v32 = vmul.f32 %v761_v29, %v343_v20  ;;  %v562_v33 = vsel %vm561_vm4, %v757_v18, %v558_v27  ;;  %v970_v34 = vpop.xlane.xlu1 %354  ;;  %vm575_vm7 = vweird.f32 %v761_v29 }
 0x195   :  { %v567_v36 = vsel %vm564_vm5, %v566_v30, %v562_v33  ;;  %764 = vrcp.f32 %v970_v34  ;;  %v413_v49 = vpop.f32.mrf.mxu1  ;;  %vm576_vm12 = vmor %vm574_vm9, %vm575_vm7  ;;  %v640_v4 = vand.u32 2147483648, %v970_v34  ;;  %v638_v5 = vand.u32 2147483647, %v970_v34 }
 0x196   :  { %v571_v39 = vsub.f32 1.0, %v570_v32  ;;  %v674_v40 = vmul.f32 %v567_v36, %v390_v35  ;;  %v587_v41 = vmul.f32 %v759_v25, %v586_v31  ;;  %vm634_vm2 = vweird.f32 %v970_v34 }
 0x197   :  { %v611_v9 = vor.u32 1.1754944e-38, %v610_v0  ;;  %vm609_vm4 = vcmp.eq.f32.partialorder %v608_v63, 8.507059e+37  ;;  %vm639_vm6 = vcmp.eq.f32.partialorder %v638_v5, 8.507059e+37  ;;  %v641_v14 = vor.u32 1.1754944e-38, %v640_v4 }
 0x198   :  { %682 = vst.msk [vmem:[#allocation10] sm:$0xff] %vm80_vm0, %v674_v40  ;;  %v572_v44 = vmul.f32 %v761_v29, %v571_v39  ;;  %v588_v45 = vadd.f32 %v759_v25, %v587_v41 }
 0x199   :  { %v763_v46 = vpop.eup %762  ;;  %v436_v55 = vpop.f32.mrf.mxu2 }
 0x19a   :  { %v600_v48 = vmul.f32 %v763_v46, %v967_v28  ;;  %v573_v50 = vadd.f32 %v761_v29, %v572_v44  ;;  %v592_v51 = vsel %vm591_vm10, %v759_v25, %v588_v45  ;;  %v975_v52 = vpop.xlane.xlu2 %357  ;;  %vm605_vm14 = vweird.f32 %v763_v46 }
 0x19b   :  { %v765_v53 = vpop.eup %764  ;;  %v597_v56 = vsel %vm594_vm11, %v596_v47, %v592_v51  ;;  %766 = vrcp.f32 %v975_v52  ;;  %v978_v57 = vpop.xlane.xlu0 %351  ;;  %vm606_vm3 = vmor %vm604_vm1, %vm605_vm14  ;;  %v655_v22 = vand.u32 2147483648, %v975_v52  ;;  %v653_v25 = vand.u32 2147483647, %v975_v52 }
 0x19c   :  { %v601_v58 = vsub.f32 1.0, %v600_v48  ;;  %v630_v59 = vmul.f32 %v765_v53, %v970_v34  ;;  %v577_v60 = vsel %vm576_vm12, %v761_v29, %v573_v50  ;;  %v676_v61 = vmul.f32 %v597_v56, %v436_v55 }
 0x19d   :  { %v582_v62 = vsel %vm579_vm13, %v581_v54, %v577_v60  ;;  %768 = vrcp.f32 %v978_v57  ;;  %vm635_vm15 = vweird.f32 %v765_v53  ;;  %v505_v23 = vpop.f32.mrf.mxu1  ;;  %vm649_vm8 = vweird.f32 %v975_v52 }
 0x19e   :  { %v631_v1 = vsub.f32 1.0, %v630_v59  ;;  %v675_v2 = vmul.f32 %v582_v62, %v413_v49  ;;  %684 = vst.msk [vmem:[#allocation10 + $0x10] sm:$0xff] %vm80_vm0, %v676_v61  ;;  %v602_v3 = vmul.f32 %v763_v46, %v601_v58  ;;  %vm636_vm5 = vmor %vm634_vm2, %vm635_vm15  ;;  %v625_v29 = vand.u32 2147483648, %v978_v57 }
 0x19f   :  { %v623_v32 = vand.u32 2147483647, %v978_v57  ;;  %v656_v33 = vor.u32 1.1754944e-38, %v655_v22  ;;  %vm654_vm11 = vcmp.eq.f32.partialorder %v653_v25, 8.507059e+37  ;;  %vm619_vm12 = vweird.f32 %v978_v57 }
 0x1a0   :  { %v632_v6 = vmul.f32 %v765_v53, %v631_v1  ;;  %683 = vst.msk [vmem:[#allocation10 + $0x8] sm:$0xff] %vm80_vm0, %v675_v2  ;;  %v603_v7 = vadd.f32 %v763_v46, %v602_v3  ;;  %v626_v39 = vor.u32 1.1754944e-38, %v625_v29 }
 0x1a1   :  { %v767_v8 = vpop.eup %766  ;;  %v459_v15 = vpop.f32.mrf.mxu3  ;;  %vm624_vm14 = vcmp.eq.f32.partialorder %v623_v32, 8.507059e+37 }
 0x1a2   :  { %v645_v10 = vmul.f32 %v767_v8, %v975_v52  ;;  %v633_v11 = vadd.f32 %v765_v53, %v632_v6  ;;  %v607_v12 = vsel %vm606_vm3, %v763_v46, %v603_v7  ;;  %vm650_vm7 = vweird.f32 %v767_v8  ;;  %v528_v37 = vpop.f32.mrf.mxu2 }
 0x1a3   :  { %v769_v13 = vpop.eup %768  ;;  %v612_v16 = vsel %vm609_vm4, %v611_v9, %v607_v12  ;;  %v361_v17 = vpop.xlane.xlu0 %360  ;;  %vm651_vm10 = vmor %vm649_vm8, %vm650_vm7 }
 0x1a4   :  { %v646_v18 = vsub.f32 1.0, %v645_v10  ;;  %v615_v19 = vmul.f32 %v769_v13, %v978_v57  ;;  %v637_v20 = vsel %vm636_vm5, %v765_v53, %v633_v11  ;;  %v677_v21 = vmul.f32 %v612_v16, %v459_v15  ;;  %v482_v43 = vpop.f32.mrf.mxu0 }
 0x1a5   :  { %v642_v24 = vsel %vm639_vm6, %v641_v14, %v637_v20  ;;  %770 = vrcp.f32 %v361_v17  ;;  %vm620_vm9 = vweird.f32 %v769_v13  ;;  %v670_v47 = vand.u32 2147483648, %v361_v17 }
 0x1a6   :  { %v647_v26 = vmul.f32 %v767_v8, %v646_v18  ;;  %v616_v27 = vsub.f32 1.0, %v615_v19  ;;  %v679_v28 = vmul.f32 %v642_v24, %v505_v23  ;;  %685 = vst.msk [vmem:[#allocation10 + $0x18] sm:$0xff] %vm80_vm0, %v677_v21  ;;  %vm621_vm13 = vmor %vm619_vm12, %vm620_vm9  ;;  %v668_v49 = vand.u32 2147483647, %v361_v17 }
 0x1a7   :  { %vm664_vm1 = vweird.f32 %v361_v17  ;;  %v671_v51 = vor.u32 1.1754944e-38, %v670_v47 }
 0x1a8   :  { %687 = vst.msk [vmem:[#allocation10 + $0x28] sm:$0xff] %vm80_vm0, %v679_v28  ;;  %v648_v30 = vadd.f32 %v767_v8, %v647_v26  ;;  %v617_v31 = vmul.f32 %v769_v13, %v616_v27  ;;  %vm669_vm3 = vcmp.eq.f32.partialorder %v668_v49, 8.507059e+37 }
 0x1a9   :  { %v551_v53 = vpop.f32.mrf.mxu3 }
 0x1aa   :  { %v652_v34 = vsel %vm651_vm10, %v767_v8, %v648_v30  ;;  %v618_v35 = vadd.f32 %v769_v13, %v617_v31 }
 0x1ab   :  { %v771_v36 = vpop.eup %770  ;;  %v657_v38 = vsel %vm654_vm11, %v656_v33, %v652_v34 }
 0x1ac   :  { %v680_v40 = vmul.f32 %v657_v38, %v528_v37  ;;  %v660_v41 = vmul.f32 %v771_v36, %v361_v17  ;;  %v622_v42 = vsel %vm621_vm13, %v769_v13, %v618_v35  ;;  %vm665_vm15 = vweird.f32 %v771_v36 }
 0x1ad   :  { %v627_v44 = vsel %vm624_vm14, %v626_v39, %v622_v42  ;;  %vm666_vm2 = vmor %vm664_vm1, %vm665_vm15 }
 0x1ae   :  { %688 = vst.msk [vmem:[#allocation10 + $0x30] sm:$0xff] %vm80_vm0, %v680_v40  ;;  %v661_v45 = vsub.f32 1.0, %v660_v41  ;;  %v678_v46 = vmul.f32 %v627_v44, %v482_v43 }
 0x1b0   :  { %v662_v48 = vmul.f32 %v771_v36, %v661_v45  ;;  %686 = vst.msk [vmem:[#allocation10 + $0x20] sm:$0xff] %vm80_vm0, %v678_v46 }
 0x1b2   :  { %v663_v50 = vadd.f32 %v771_v36, %v662_v48 }
 0x1b4   :  { %v667_v52 = vsel %vm666_vm2, %v771_v36, %v663_v50 }
 0x1b5   :  { %v672_v54 = vsel %vm669_vm3, %v671_v51, %v667_v52 }
 0x1b6   :  { %v681_v55 = vmul.f32 %v672_v54, %v551_v53 }
 0x1b8   :  { %689 = vst.msk [vmem:[#allocation10 + $0x38] sm:$0xff] %vm80_vm0, %v681_v55 }
 0x1b9   :  { %702 = dma.vmem_to_hbm [thread:$0]  %s695_s29, 1024, %s697_s6, [#allocation6], %s875_s22, %s875_s22, %s876_s23  }
 0x1ba   :  { %872 = dma.done.wait [#allocation6], 1024  }
 0x1bb   :  { %873 = vsyncadd [#allocation6], 4294966272 }
 0x1bc   :  { %707 = vsyncpa [#allocation5], 1 }
 0x1bd   :  { %708 = vsyncpa [#allocation8], 1 }
 0x1be   :  { %709 = vsyncpa [#allocation6], 1 }

</bundles_post_ra>
